<compile_context>
chip_gen: v5e
topology: v5e:2x2
jax: 0.10.0
libtpu: 0.0.40
codegen_flags: <defaults>
</compile_context>

<pallas_src>
import jax
import jax.numpy as jnp
from jax.experimental import pallas as pl
from jax.experimental.pallas import tpu as pltpu

IN_FEATURES = 15
HIDDEN = 50


def fc2_kernel(x_ref, w1_ref, b1_ref, w2_ref, b2_ref, o_ref):
    # x_ref:  [15, T] bf16 (batch on lanes)      w1_ref: [50, 15] bf16
    # b1_ref: [50, 1] f32                        w2_ref: [1, 50]  bf16
    # b2_ref: [1]     f32 (SMEM scalar)          o_ref:  [1, T]   f32 (lane-dense)
    h = jnp.dot(w1_ref[...], x_ref[...], preferred_element_type=jnp.float32)
    h = jnp.maximum(h + b1_ref[...], 0.0)                      # bias + ReLU in f32 (VPU)
    o = jnp.dot(w2_ref[...], h.astype(jnp.bfloat16),
                preferred_element_type=jnp.float32) + b2_ref[0]
    o_ref[...] = jax.nn.sigmoid(o)                             # f32 sigmoid (EUP)


def fc2_forward(x, w1, b1, w2, b2, *, tile_n=2048):
    """x: [N, 1, 15]; w1: [50, 15]; b1: [50]; w2: [1, 50]; b2: [1] -> returns [N]."""
    n = x.shape[0]

    # Batch tile on the lane axis: at least 128 lanes, at most tile_n, pad N up to it.
    tile = min(tile_n, pl.cdiv(n, 128) * 128)
    n_pad = pl.cdiv(n, tile) * tile
    grid_n = n_pad // tile

    # Layout plumbing (wrapper-side): batch-on-lanes + bf16 inputs (kernel is HBM-bound).
    xt = x.reshape(n, IN_FEATURES).T.astype(jnp.bfloat16)      # [15, N]
    if n_pad != n:
        xt = jnp.pad(xt, ((0, 0), (0, n_pad - n)))

    w1_b = w1.astype(jnp.bfloat16)                             # [50, 15]
    w2_b = w2.astype(jnp.bfloat16)                             # [1, 50]
    b1_c = b1.reshape(HIDDEN, 1).astype(jnp.float32)           # [50, 1]
    b2_s = b2.reshape(1).astype(jnp.float32)                   # [1] scalar -> SMEM

    cost = pl.CostEstimate(
        flops=2 * n_pad * (IN_FEATURES * HIDDEN + HIDDEN),
        transcendentals=n_pad,
        bytes_accessed=n_pad * (IN_FEATURES * 2 + 4)
        + (HIDDEN * IN_FEATURES + HIDDEN) * 2 + HIDDEN * 4 + 4,
    )

    out = pl.pallas_call(
        fc2_kernel,
        out_shape=jax.ShapeDtypeStruct((1, n_pad), jnp.float32),
        grid=(grid_n,),
        in_specs=[
            pl.BlockSpec((IN_FEATURES, tile), lambda i: (0, i)),    # x: tiled on lanes
            pl.BlockSpec((HIDDEN, IN_FEATURES), lambda i: (0, 0)),  # w1: resident
            pl.BlockSpec((HIDDEN, 1), lambda i: (0, 0)),            # b1: resident
            pl.BlockSpec((1, HIDDEN), lambda i: (0, 0)),            # w2: resident
            pl.BlockSpec(memory_space=pltpu.MemorySpace.SMEM),      # b2: scalar in SMEM
        ],
        out_specs=pl.BlockSpec((1, tile), lambda i: (0, i)),
        compiler_params=pltpu.CompilerParams(
            dimension_semantics=("parallel",)),                     # v7x: 2 TCs
        cost_estimate=cost,
    )(xt, w1_b, b1_c, w2_b, b2_s)

    return out.reshape(-1)[:n]                                      # o4.reshape(-1) -> [N]


def init_params(key):
    # Deterministic init mimicking nn.Linear's U(-1/sqrt(fan_in), 1/sqrt(fan_in)).
    k1, k2, k3, k4 = jax.random.split(key, 4)
    bound1 = 1.0 / jnp.sqrt(15.0)
    bound2 = 1.0 / jnp.sqrt(50.0)
    w1 = jax.random.uniform(k1, (50, 15), jnp.float32, -bound1, bound1)
    b1 = jax.random.uniform(k2, (50,), jnp.float32, -bound1, bound1)
    w2 = jax.random.uniform(k3, (1, 50), jnp.float32, -bound2, bound2)
    b2 = jax.random.uniform(k4, (1,), jnp.float32, -bound2, bound2)
    return w1, b1, w2, b2


if __name__ == "__main__":
    key = jax.random.PRNGKey(0)
    kx, kp = jax.random.split(key)

    N = 8
    x = jax.random.normal(kx, (N, 1, 15), jnp.float32)
    w1, b1, w2, b2 = init_params(kp)

    out = jax.block_until_ready(fc2_forward(x, w1, b1, w2, b2))
    assert out.shape == (N,)

    # Reference with matching bf16 rounding of inputs/weights, f32 accumulation.
    xb = x.reshape(N, 15).astype(jnp.bfloat16).astype(jnp.float32)
    w1b = w1.astype(jnp.bfloat16).astype(jnp.float32)
    w2b = w2.astype(jnp.bfloat16).astype(jnp.float32)
    h = jnp.maximum(xb @ w1b.T + b1, 0.0)
    ref = jax.nn.sigmoid(
        h.astype(jnp.bfloat16).astype(jnp.float32) @ w2b.T + b2
    ).reshape(-1)
    assert jnp.allclose(out, ref, atol=1e-4), (out, ref)

    # Sanity check against the full-f32 PyTorch-equivalent math (loose tol for bf16 in).
    ref_f32 = jax.nn.sigmoid(
        jnp.maximum(x.reshape(N, 15) @ w1.T + b1, 0.0) @ w2.T + b2
    ).reshape(-1)
    assert jnp.allclose(out, ref_f32, atol=5e-2), (out, ref_f32)

    print("KERNEL_OK")
</pallas_src>

<mosaic_0001>
module attributes {stable_mosaic.version = 11 : i64} {
  func.func @fc2_kernel(%arg0: i32, %arg1: memref<15x128xbf16, #tpu.memory_space<vmem>>, %arg2: memref<50x15xbf16, #tpu.memory_space<vmem>>, %arg3: memref<50x1xf32, #tpu.memory_space<vmem>>, %arg4: memref<1x50xbf16, #tpu.memory_space<vmem>>, %arg5: memref<1xf32, #tpu.memory_space<smem>>, %arg6: memref<1x128xf32, #tpu.memory_space<vmem>>) attributes {dimension_semantics = [#tpu.dimension_semantics<parallel>], iteration_bounds = array<i64: 1>, scalar_prefetch = 0 : i64, scratch_operands = 0 : i64, tpu.core_type = #tpu.core_type<tc>, window_params = [{transform_indices = @transform_0, window_bounds = array<i64: 15, 128>}, {pipeline_mode = #tpu.pipeline_mode<synchronous>, transform_indices = @transform_1, window_bounds = array<i64: 50, 15>}, {pipeline_mode = #tpu.pipeline_mode<synchronous>, transform_indices = @transform_2, window_bounds = array<i64: 50, 1>}, {pipeline_mode = #tpu.pipeline_mode<synchronous>, transform_indices = @transform_3, window_bounds = array<i64: 1, 50>}, {transform_indices = @transform_4, window_bounds = array<i64: 1>}, {transform_indices = @transform_5, window_bounds = array<i64: 1, 128>}]} {
    %c0 = arith.constant 0 : index
    %c0_0 = arith.constant 0 : index
    %0 = vector.load %arg2[%c0, %c0_0] : memref<50x15xbf16, #tpu.memory_space<vmem>>, vector<50x15xbf16>
    %c0_1 = arith.constant 0 : index
    %c0_2 = arith.constant 0 : index
    %1 = vector.load %arg1[%c0_1, %c0_2] : memref<15x128xbf16, #tpu.memory_space<vmem>>, vector<15x128xbf16>
    %cst = arith.constant dense<0.000000e+00> : vector<50x128xf32>
    %2 = tpu.matmul %0, %1, %cst {dimension_numbers = #tpu.dot_dimension_numbers<[1], [0], [0], [1], [0, 0, 1, 1], [], []>} : vector<50x15xbf16>, vector<15x128xbf16>, vector<50x128xf32> -> vector<50x128xf32>
    %c0_3 = arith.constant 0 : index
    %c0_4 = arith.constant 0 : index
    %3 = vector.load %arg3[%c0_3, %c0_4] : memref<50x1xf32, #tpu.memory_space<vmem>>, vector<50x1xf32>
    %4 = vector.broadcast %3 : vector<50x1xf32> to vector<50x128xf32>
    %5 = arith.addf %2, %4 : vector<50x128xf32>
    %cst_5 = arith.constant 0.000000e+00 : f32
    %6 = vector.broadcast %cst_5 : f32 to vector<50x128xf32>
    %7 = arith.maximumf %5, %6 : vector<50x128xf32>
    %c0_6 = arith.constant 0 : index
    %c0_7 = arith.constant 0 : index
    %8 = vector.load %arg4[%c0_6, %c0_7] : memref<1x50xbf16, #tpu.memory_space<vmem>>, vector<1x50xbf16>
    %9 = arith.truncf %7 : vector<50x128xf32> to vector<50x128xbf16>
    %cst_8 = arith.constant dense<0.000000e+00> : vector<1x128xf32>
    %10 = tpu.matmul %8, %9, %cst_8 {dimension_numbers = #tpu.dot_dimension_numbers<[1], [0], [0], [1], [0, 0, 1, 1], [], []>} : vector<1x50xbf16>, vector<50x128xbf16>, vector<1x128xf32> -> vector<1x128xf32>
    %c0_9 = arith.constant 0 : index
    %11 = memref.load %arg5[%c0_9] : memref<1xf32, #tpu.memory_space<smem>>
    %12 = vector.broadcast %11 : f32 to vector<1x128xf32>
    %13 = arith.addf %10, %12 : vector<1x128xf32>
    %14 = arith.negf %13 : vector<1x128xf32>
    %15 = math.exp %14 : vector<1x128xf32>
    %cst_10 = arith.constant 1.000000e+00 : f32
    %16 = vector.broadcast %cst_10 : f32 to vector<1x128xf32>
    %17 = arith.addf %16, %15 : vector<1x128xf32>
    %18 = arith.divf %16, %17 : vector<1x128xf32>
    %c0_11 = arith.constant 0 : index
    %c0_12 = arith.constant 0 : index
    %19 = vector.load %arg6[%c0_11, %c0_12] : memref<1x128xf32, #tpu.memory_space<vmem>>, vector<1x128xf32>
    tpu.vector_store %arg6[%c0_11, %c0_12], %18 {strides = array<i32>} : memref<1x128xf32, #tpu.memory_space<vmem>>, vector<1x128xf32>,
    return
  }
  func.func @transform_0(%arg0: i32) -> (i32, i32) {
    %c0_i32 = arith.constant 0 : i32
    %c0_i32_0 = arith.constant 0 : i32
    return %c0_i32, %arg0 : i32, i32
  }
  func.func @transform_1(%arg0: i32) -> (i32, i32) {
    %c0_i32 = arith.constant 0 : i32
    %c0_i32_0 = arith.constant 0 : i32
    %c0_i32_1 = arith.constant 0 : i32
    return %c0_i32, %c0_i32_0 : i32, i32
  }
  func.func @transform_2(%arg0: i32) -> (i32, i32) {
    %c0_i32 = arith.constant 0 : i32
    %c0_i32_0 = arith.constant 0 : i32
    %c0_i32_1 = arith.constant 0 : i32
    return %c0_i32, %c0_i32_0 : i32, i32
  }
  func.func @transform_3(%arg0: i32) -> (i32, i32) {
    %c0_i32 = arith.constant 0 : i32
    %c0_i32_0 = arith.constant 0 : i32
    %c0_i32_1 = arith.constant 0 : i32
    return %c0_i32, %c0_i32_0 : i32, i32
  }
  func.func @transform_4(%arg0: i32) -> i32 {
    %c0_i32 = arith.constant 0 : i32
    %c0_i32_0 = arith.constant 0 : i32
    return %c0_i32 : i32
  }
  func.func @transform_5(%arg0: i32) -> (i32, i32) {
    %c0_i32 = arith.constant 0 : i32
    %c0_i32_0 = arith.constant 0 : i32
    return %c0_i32, %arg0 : i32, i32
  }
}

</mosaic_0001>

<bundles_post_ra>
// kernel: tpu_custom_call.1
= control target key start
LH: loop header
LB: loop body
LE: loop exit
PB: predicated region body
PF: predicated region fallthrough
CT: control target
= control target key end

     0   :  { %vm110_vm0 = vcmask 1046528   ;;  %vm111_vm1 = vcmask 1047552   ;;  %v280_v1 = vmov 65535   ;;  %v281_v6 = vmov 0   ;;  %s362_s0 = inlined_call_operand.vmem [shape: bf16[15,128], index: 0, kind: input, shape index: {}]   ;;  %s363_s1 = inlined_call_operand.vmem [shape: bf16[50,15], index: 1, kind: input, shape index: {}]   ;;  %s364_s2 = inlined_call_operand.vmem [shape: f32[50,1], index: 2, kind: input, shape index: {}]   ;;  %s365_s3 = inlined_call_operand.vmem [shape: bf16[1,50], index: 3, kind: input, shape index: {}]   ;;  %s366_s4 = inlined_call_operand.<no memory space> [shape: f32[1], index: 4, kind: input, shape index: {}]   ;;  %s367_s5 = inlined_call_operand.hbm [shape: f32[1,128], index: 5, kind: output, shape index: {}]  }
   0x1   :  { %v241_v0 = vld [vmem:[%s362_s0] sm:$0xff]  ;;  %v112_v2 = vsel %vm110_vm0, 4294967295, %v280_v1  ;;  %v37_v3 = vld [vmem:[%s364_s2 + $0x28] sm:$0xff]  ;;  %v29_v4 = vld [vmem:[%s363_s1 + $0x18] sm:$0x1]  ;;  %248 = vset.pattern.permute.xlu1 %v281_v6  ;;  %247 = vset.pattern.permute.xlu0 %v281_v6 }
   0x2   :  { %v113_v5 = vsel %vm111_vm1, %v112_v2, 0  ;;  %v87_v7 = vunpack.c.l.b16 %v29_v4  ;;  %v38_v8 = vld [vmem:[%s364_s2 + $0x30] sm:$0x3]  ;;  %66 = vperm.xlu1 %248, %v37_v3   ;;  %v35_v10 = vld [vmem:[%s364_s2 + $0x18] sm:$0xff]  ;;  %v239_v11 = vld [vmem:[%s363_s1 + $0x8] sm:$0xff]  ;;  %249 = vset.pattern.permute.xlu2 %v281_v6 }
   0x3   :  { %v115_v9 = vand.u32 %v241_v0, %v113_v5  ;;  %71 = vperm.xlu0 %247, %v38_v8  }
   0x4   :  { %v91_v12 = vpack.c.b16 %v87_v7, %v87_v7 }
   0x5   :  { %11 = vsyncpa [#allocation4], 0  ;;  %242 = vmatpush.bf16.msra.mxu2 %v115_v9  ;;  %vm97_vm2 = vcmask 121856   ;;  %243 = vmatpush.bf16.msra.mxu3 %v115_v9  ;;  %v238_v13 = vld [vmem:[%s363_s1] sm:$0xff]  ;;  %v34_v14 = vld [vmem:[%s364_s2 + $0x10] sm:$0xff]  ;;  %vm163_vm3 = vcmask 1040384   ;;  %v158_v54 = vstv %s366_s4 }
   0x6   :  { %124 = vmatpush.bf16.msra.mxu0 %v115_v9  ;;  %56 = vperm.xlu2 %249, %v35_v10   ;;  %v36_v15 = vld [vmem:[%s364_s2 + $0x20] sm:$0xff]  ;;  %v33_v17 = vld [vmem:[%s364_s2 + $0x8] sm:$0xff]  ;;  %v240_v18 = vld [vmem:[%s363_s1 + $0x10] sm:$0xff]  ;;  %vm159_vm4 = vcmask 408576   ;;  %s207_s4 = sshll.u32 %s367_s5, 4  ;;  %s208_s4 = int_to_ptr.hbm [resolvable:$true] %s207_s4 }
   0x7   :  { %v32_v16 = vld [vmem:[%s364_s2] sm:$0xff] }
   0x8   :  { %233 = vmatmul.msk.bf16.vlgmr.msra.gmra.mxu2 %vm97_vm2, %v239_v11  ;;  %235 = vmatmul.msk.bf16.vlgmr.msra.gmra.mxu3 %vm97_vm2, %v91_v12  ;;  %v152_v53 = vld [vmem:[%s365_s3] sm:$0x1]  ;;  %s282_s3 = smov [#allocation3]  }
   0x9   :  { %232 = vmatmul.msk.bf16.vlgmr.msra.gmra.mxu0 %vm97_vm2, %v238_v13  ;;  %s205_s18 = sshll.u32 %s282_s3, 4  ;;  %s206_s18 = int_to_ptr.vmem [resolvable:$true] %s205_s18 }
   0xa   :  { %51 = vperm.xlu1 %248, %v34_v14  }
   0xb   :  { %61 = vperm.xlu0 %247, %v36_v15  }
   0xe   :  { %41 = vperm.xlu2 %249, %v32_v16  }
  0x13   :  { %46 = vperm.xlu0 %247, %v33_v17  }
  0x18   :  { %234 = vmatmul.msk.bf16.gmra.mxu2 %vm97_vm2, %v240_v18 }
  0x60   :  { %v57_v30 = vpop.permute.xlu2 %56 }
  0x68   :  { %v42_v37 = vpop.permute.xlu2 %41 }
  0x74   :  { %v67_v28 = vpop.permute.xlu1 %66 }
  0x75   :  { %v72_v19 = vpop.permute.xlu0 %71 }
  0x7c   :  { %v52_v34 = vpop.permute.xlu1 %51 }
  0x7d   :  { %v62_v29 = vpop.permute.xlu0 %61 }
  0x85   :  { %v47_v39 = vpop.permute.xlu0 %46 }
  0x86   :  { %v126_v31 = vpop.f32.mrf.mxu0 }
  0x87   :  { %v127_v45 = vadd.f32 %v126_v31, %v42_v37 }
  0x89   :  { %v145_v49 = vmax.f32 %v127_v45, 0.0 }
  0x8b   :  { %v131_v20 = vpop.f32.mrf.mxu2  ;;  %v141_v21 = vpop.f32.mrf.mxu3 }
  0x8c   :  { %v142_v22 = vadd.f32 %v141_v21, %v72_v19  ;;  %v132_v41 = vadd.f32 %v131_v20, %v52_v34 }
  0x8e   :  { %v151_v23 = vmax.f32 %v142_v22, 0.0  ;;  %v128_v40 = vpop.f32.mrf.mxu0  ;;  %v147_v48 = vmax.f32 %v132_v41, 0.0 }
  0x8f   :  { %v129_v46 = vadd.f32 %v128_v40, %v47_v39 }
  0x90   :  { %v156_v24 = vpack.c.bf16 %v151_v23, %v151_v23 }
  0x91   :  { %v146_v50 = vmax.f32 %v129_v46, 0.0 }
  0x92   :  { %v165_v25 = vsel %vm163_vm3, %v156_v24, 0 }
  0x93   :  { %v133_v26 = vpop.f32.mrf.mxu2  ;;  %v143_v27 = vpop.f32.mrf.mxu3  ;;  %171 = vmatpush.bf16.msra.mxu1 %v165_v25  ;;  %v153_v52 = vpack.c.bf16 %v146_v50, %v145_v49 }
  0x94   :  { %v134_v36 = vadd.f32 %v133_v26, %v57_v30 }
  0x96   :  { %v148_v44 = vmax.f32 %v134_v36, 0.0 }
  0x98   :  { %v154_v51 = vpack.c.bf16 %v148_v44, %v147_v48 }
  0x9b   :  { %v136_v32 = vpop.f32.mrf.mxu2 }
  0x9c   :  { %v137_v33 = vadd.f32 %v136_v32, %v62_v29 }
  0x9e   :  { %v149_v42 = vmax.f32 %v137_v33, 0.0 }
  0xa3   :  { %v138_v35 = vpop.f32.mrf.mxu2 }
  0xa4   :  { %v139_v38 = vadd.f32 %v138_v35, %v67_v28 }
  0xa6   :  { %v150_v43 = vmax.f32 %v139_v38, 0.0 }
  0xa8   :  { %v155_v47 = vpack.c.bf16 %v150_v43, %v149_v42 }
  0xaa   :  { %172 = vmatpush.bf16.msra.mxu1 %v155_v47 }
  0xae   :  { %173 = vmatpush.bf16.msra.mxu1 %v154_v51 }
  0xb2   :  { %174 = vmatpush.bf16.msra.mxu1 %v153_v52 }
  0xb5   :  { %236 = vmatmul.msk.bf16.vlgmr.msra.gmra.mxu1 %vm159_vm4, %v152_v53 }
 0x132   :  { %v176_v55 = vpop.f32.mrf.mxu1 }
 0x133   :  { %v177_v56 = vadd.f32 %v176_v55, %v158_v54 }
 0x135   :  { %v237_v57 = vmul.f32 -1.442695, %v177_v56 }
 0x137   :  { %250 = vpow2.f32 %v237_v57 }
 0x13a   :  { %v178_v58 = vpop.f32.mrf.mxu1 }
 0x13d   :  { %v251_v59 = vpop.eup %250 }
 0x13e   :  { %v183_v60 = vadd.f32 1.0, %v251_v59 }
 0x140   :  { %252 = vrcp.f32 %v183_v60  ;;  %v195_v0 = vand.u32 2147483648, %v183_v60  ;;  %v193_v2 = vand.u32 2147483647, %v183_v60  ;;  %vm189_vm6 = vweird.f32 %v183_v60 }
 0x142   :  { %v196_v4 = vor.u32 1.1754944e-38, %v195_v0  ;;  %vm194_vm8 = vcmp.eq.f32.partialorder %v193_v2, 8.507059e+37 }
 0x146   :  { %v253_v61 = vpop.eup %252 }
 0x147   :  { %v185_v62 = vmul.f32 %v253_v61, %v183_v60  ;;  %vm190_vm5 = vweird.f32 %v253_v61 }
 0x148   :  { %vm191_vm7 = vmor %vm189_vm6, %vm190_vm5 }
 0x149   :  { %v186_v63 = vsub.f32 1.0, %v185_v62 }
 0x14b   :  { %v187_v1 = vmul.f32 %v253_v61, %v186_v63 }
 0x14d   :  { %v188_v3 = vadd.f32 %v253_v61, %v187_v1 }
 0x14f   :  { %v192_v5 = vsel %vm191_vm7, %v253_v61, %v188_v3 }
 0x150   :  { %v197_v6 = vsel %vm194_vm8, %v196_v4, %v192_v5 }
 0x151   :  { %199 = vst [vmem:[#allocation3] sm:$0x1] %v197_v6 }
 0x152   :  { %210 = dma.vmem_to_hbm [thread:$0]  %s206_s18, 16, %s208_s4, [#allocation4]  }
 0x153   :  { %278 = dma.done.wait [#allocation4], 16  }
 0x154   :  { %279 = vsyncadd [#allocation4], 4294967280 }
 0x155   :  { %215 = vsyncpa [#allocation4], 1 }

</bundles_post_ra>
